<compile_context>
chip_gen: v6e
topology: v6e:2x2x1
jax: 0.10.0
libtpu: 0.0.40
codegen_flags: <defaults>
</compile_context>

<pallas_src>
import functools

import jax
import jax.numpy as jnp
from jax.experimental import pallas as pl
from jax.experimental.pallas import tpu as pltpu


def dqn_ram_kernel(x_ref,
                   w1_ref, b1_ref,
                   w2_ref, b2_ref,
                   w3_ref, b3_ref,
                   w4_ref, b4_ref,
                   out_ref):
    # Weights may be f32 or bf16; activations are kept in the weight dtype for
    # the MXU, accumulation is forced to f32, bias-add / ReLU stay in f32.
    cdt = w1_ref.dtype

    x = x_ref[...].astype(cdt)

    h = jnp.dot(x, w1_ref[...], preferred_element_type=jnp.float32) + b1_ref[...]
    h = jnp.maximum(h, 0.0)

    h = jnp.dot(h.astype(cdt), w2_ref[...], preferred_element_type=jnp.float32) + b2_ref[...]
    h = jnp.maximum(h, 0.0)

    h = jnp.dot(h.astype(cdt), w3_ref[...], preferred_element_type=jnp.float32) + b3_ref[...]
    h = jnp.maximum(h, 0.0)

    out = jnp.dot(h.astype(cdt), w4_ref[...], preferred_element_type=jnp.float32) + b4_ref[...]
    out_ref[...] = out.astype(out_ref.dtype)


def _round_up(x, m):
    return (x + m - 1) // m * m


def prepare_params(params, *, weights_dtype=jnp.float32):
    """One-time weight prep (call OUTSIDE the training/inference loop).

    - Pads layer-3 out-dim and layer-4 in/out dims to 128 lanes with exact zeros.
    - Casts weights to `weights_dtype` (bf16 recommended on v5e/v6e/v7x: the MXU
      is bf16-native on all of them); biases stay f32 for the VPU bias-add.
    """
    LANE = 128
    w1, w2, w3, w4 = params["w1"], params["w2"], params["w3"], params["w4"]
    b1, b2, b3, b4 = params["b1"], params["b2"], params["b3"], params["b4"]

    num_actions = w4.shape[1]
    hid3 = w3.shape[1]                       # 64
    k3_pad = _round_up(hid3, LANE)           # 64  -> 128
    out_pad = _round_up(num_actions, LANE)   # 6   -> 128

    w3p = jnp.zeros((w3.shape[0], k3_pad), jnp.float32).at[:, :hid3].set(w3)
    b3p = jnp.zeros((1, k3_pad), jnp.float32).at[:, :hid3].set(b3)
    w4p = jnp.zeros((k3_pad, out_pad), jnp.float32).at[:hid3, :num_actions].set(w4)
    b4p = jnp.zeros((1, out_pad), jnp.float32).at[:, :num_actions].set(b4)

    return {
        "w1": w1.astype(weights_dtype), "b1": b1.astype(jnp.float32),
        "w2": w2.astype(weights_dtype), "b2": b2.astype(jnp.float32),
        "w3": w3p.astype(weights_dtype), "b3": b3p,
        "w4": w4p.astype(weights_dtype), "b4": b4p,
    }


def _choose_tiling(B, sub):
    """Pick (tm, padded_batch). `sub` is the sublane alignment (8 f32 / 16 bf16)."""
    b_al = max(_round_up(B, sub), sub)
    if b_al < 2 * sub:
        # Tiny inference batch: latency-bound, single grid step.
        return b_al, b_al
    if b_al <= 1024:
        # Two equal tiles so v7x's 2nd TensorCore gets work; minimal padding waste.
        tm = _round_up((b_al + 1) // 2, sub)
        return tm, 2 * tm
    # Large batch: prefer big tiles (fewer ~0.35us grid steps) unless padding
    # waste gets excessive.
    for tm in (512, 256, 128):
        b_pad = _round_up(b_al, tm)
        if (b_pad - B) / b_pad <= 0.25 or tm == 128:
            return tm, b_pad


@functools.partial(jax.jit, static_argnames=("num_actions",))
def dqn_ram_forward(x, prep, *, num_actions):
    """x: (B, in_features) f32; prep: output of prepare_params()."""
    B, in_features = x.shape
    cdt = prep["w1"].dtype
    out_pad = prep["w4"].shape[1]

    sub = 16 if cdt == jnp.bfloat16 else 8
    tm, b_pad = _choose_tiling(B, sub)
    grid_m = b_pad // tm

    # Stream x in the compute dtype (halves per-row HBM traffic on the bf16 path).
    xs = x.astype(cdt)
    if b_pad != B:
        xs = jnp.pad(xs, ((0, b_pad - B), (0, 0)))

    wb_args = [prep["w1"], prep["b1"], prep["w2"], prep["b2"],
               prep["w3"], prep["b3"], prep["w4"], prep["b4"]]

    # Batch axis is tiled and streamed; weights/biases use constant index_maps
    # so they stay VMEM-resident across all grid iterations.
    in_specs = [pl.BlockSpec((tm, in_features), lambda i: (i, 0))]
    in_specs += [pl.BlockSpec(a.shape, lambda i: (0, 0)) for a in wb_args]
    out_spec = pl.BlockSpec((tm, out_pad), lambda i: (i, 0))

    flops = 2 * b_pad * sum(int(prep[k].shape[0]) * int(prep[k].shape[1])
                            for k in ("w1", "w2", "w3", "w4"))
    bytes_accessed = (xs.size * xs.dtype.itemsize
                      + sum(a.size * a.dtype.itemsize for a in wb_args)
                      + b_pad * out_pad * 4)
    cost = pl.CostEstimate(flops=flops, transcendentals=0,
                           bytes_accessed=bytes_accessed)

    out = pl.pallas_call(
        dqn_ram_kernel,
        out_shape=jax.ShapeDtypeStruct((b_pad, out_pad), jnp.float32),
        grid=(grid_m,),
        in_specs=in_specs,
        out_specs=out_spec,
        compiler_params=pltpu.CompilerParams(
            dimension_semantics=("parallel",)),
        cost_estimate=cost,
    )(xs, *wb_args)

    return out[:B, :num_actions]


def init_params(key, in_features=128, num_actions=6):
    """Deterministic init mimicking nn.Linear's U(-1/sqrt(fan_in), 1/sqrt(fan_in))."""
    dims = [(in_features, 256), (256, 128), (128, 64), (64, num_actions)]
    params = {}
    keys = jax.random.split(key, 2 * len(dims))
    for i, (din, dout) in enumerate(dims):
        bound = 1.0 / jnp.sqrt(jnp.float32(din))
        w = jax.random.uniform(keys[2 * i], (din, dout), jnp.float32,
                               minval=-bound, maxval=bound)
        b = jax.random.uniform(keys[2 * i + 1], (1, dout), jnp.float32,
                               minval=-bound, maxval=bound)
        params[f"w{i + 1}"] = w
        params[f"b{i + 1}"] = b
    return params


def reference_forward(x, params):
    h = jnp.maximum(x @ params["w1"] + params["b1"], 0.0)
    h = jnp.maximum(h @ params["w2"] + params["b2"], 0.0)
    h = jnp.maximum(h @ params["w3"] + params["b3"], 0.0)
    return h @ params["w4"] + params["b4"]


if __name__ == "__main__":
    key = jax.random.PRNGKey(0)
    k_params, k_x1, k_x2 = jax.random.split(key, 3)

    in_features = 128
    num_actions = 6

    params = init_params(k_params, in_features, num_actions)

    # Hoisted, one-time weight prep (padding + cast) — outside the hot loop.
    prep_f32 = prepare_params(params)
    prep_bf16 = prepare_params(params, weights_dtype=jnp.bfloat16)

    # Small inference-style batch (B=2) -> single padded (8,128) tile, f32.
    x_small = jax.random.normal(k_x1, (2, in_features), jnp.float32)
    out_small = jax.block_until_ready(
        dqn_ram_forward(x_small, prep_f32, num_actions=num_actions))
    ref_small = reference_forward(x_small, params)
    assert out_small.shape == (2, num_actions), out_small.shape
    assert jnp.allclose(out_small, ref_small, atol=2e-4, rtol=2e-4), \
        "f32 small-batch mismatch vs JAX reference"

    # Training-style batch (B=300) -> padded to 304, two tiles of 152 (feeds
    # both v7x TensorCores, <2% padding waste).
    x_big = jax.random.normal(k_x2, (300, in_features), jnp.float32)
    out_big = jax.block_until_ready(
        dqn_ram_forward(x_big, prep_f32, num_actions=num_actions))
    ref_big = reference_forward(x_big, params)
    assert out_big.shape == (300, num_actions), out_big.shape
    assert jnp.allclose(out_big, ref_big, atol=2e-4, rtol=2e-4), \
        "f32 large-batch mismatch vs JAX reference"

    # bf16 weight+activation fast path (valid on v5e/v6e/v7x): looser tolerance
    # vs the f32 reference; accumulation stays f32 inside the kernel.
    out_bf16 = jax.block_until_ready(
        dqn_ram_forward(x_small, prep_bf16, num_actions=num_actions))
    assert out_bf16.shape == (2, num_actions), out_bf16.shape
    assert jnp.allclose(out_bf16, ref_small, atol=5e-2, rtol=5e-2), \
        "bf16 mismatch vs JAX reference"

    out_bf16_big = jax.block_until_ready(
        dqn_ram_forward(x_big, prep_bf16, num_actions=num_actions))
    assert out_bf16_big.shape == (300, num_actions), out_bf16_big.shape
    assert jnp.allclose(out_bf16_big, ref_big, atol=5e-2, rtol=5e-2), \
        "bf16 large-batch mismatch vs JAX reference"

    print("KERNEL_OK")
</pallas_src>

<mosaic_0001>
module attributes {stable_mosaic.version = 11 : i64} {
  func.func @dqn_ram_kernel(%arg0: i32, %arg1: memref<8x128xf32, #tpu.memory_space<vmem>>, %arg2: memref<128x256xf32, #tpu.memory_space<vmem>>, %arg3: memref<1x256xf32, #tpu.memory_space<vmem>>, %arg4: memref<256x128xf32, #tpu.memory_space<vmem>>, %arg5: memref<1x128xf32, #tpu.memory_space<vmem>>, %arg6: memref<128x128xf32, #tpu.memory_space<vmem>>, %arg7: memref<1x128xf32, #tpu.memory_space<vmem>>, %arg8: memref<128x128xf32, #tpu.memory_space<vmem>>, %arg9: memref<1x128xf32, #tpu.memory_space<vmem>>, %arg10: memref<8x128xf32, #tpu.memory_space<vmem>>) attributes {dimension_semantics = [#tpu.dimension_semantics<parallel>], iteration_bounds = array<i64: 1>, scalar_prefetch = 0 : i64, scratch_operands = 0 : i64, tpu.core_type = #tpu.core_type<tc>, window_params = [{transform_indices = @transform_0, window_bounds = array<i64: 8, 128>}, {pipeline_mode = #tpu.pipeline_mode<synchronous>, transform_indices = @transform_1, window_bounds = array<i64: 128, 256>}, {pipeline_mode = #tpu.pipeline_mode<synchronous>, transform_indices = @transform_2, window_bounds = array<i64: 1, 256>}, {pipeline_mode = #tpu.pipeline_mode<synchronous>, transform_indices = @transform_3, window_bounds = array<i64: 256, 128>}, {pipeline_mode = #tpu.pipeline_mode<synchronous>, transform_indices = @transform_4, window_bounds = array<i64: 1, 128>}, {pipeline_mode = #tpu.pipeline_mode<synchronous>, transform_indices = @transform_5, window_bounds = array<i64: 128, 128>}, {pipeline_mode = #tpu.pipeline_mode<synchronous>, transform_indices = @transform_6, window_bounds = array<i64: 1, 128>}, {pipeline_mode = #tpu.pipeline_mode<synchronous>, transform_indices = @transform_7, window_bounds = array<i64: 128, 128>}, {pipeline_mode = #tpu.pipeline_mode<synchronous>, transform_indices = @transform_8, window_bounds = array<i64: 1, 128>}, {transform_indices = @transform_9, window_bounds = array<i64: 8, 128>}]} {
    %c0 = arith.constant 0 : index
    %c0_0 = arith.constant 0 : index
    %0 = vector.load %arg1[%c0, %c0_0] : memref<8x128xf32, #tpu.memory_space<vmem>>, vector<8x128xf32>
    %c0_1 = arith.constant 0 : index
    %c0_2 = arith.constant 0 : index
    %1 = vector.load %arg2[%c0_1, %c0_2] : memref<128x256xf32, #tpu.memory_space<vmem>>, vector<128x256xf32>
    %cst = arith.constant dense<0.000000e+00> : vector<8x256xf32>
    %2 = tpu.matmul %0, %1, %cst {dimension_numbers = #tpu.dot_dimension_numbers<[1], [0], [0], [1], [0, 0, 1, 1], [], []>} : vector<8x128xf32>, vector<128x256xf32>, vector<8x256xf32> -> vector<8x256xf32>
    %c0_3 = arith.constant 0 : index
    %c0_4 = arith.constant 0 : index
    %3 = vector.load %arg3[%c0_3, %c0_4] : memref<1x256xf32, #tpu.memory_space<vmem>>, vector<1x256xf32>
    %4 = vector.broadcast %3 : vector<1x256xf32> to vector<8x256xf32>
    %5 = arith.addf %2, %4 : vector<8x256xf32>
    %cst_5 = arith.constant 0.000000e+00 : f32
    %6 = vector.broadcast %cst_5 : f32 to vector<8x256xf32>
    %7 = arith.maximumf %5, %6 : vector<8x256xf32>
    %c0_6 = arith.constant 0 : index
    %c0_7 = arith.constant 0 : index
    %8 = vector.load %arg4[%c0_6, %c0_7] : memref<256x128xf32, #tpu.memory_space<vmem>>, vector<256x128xf32>
    %cst_8 = arith.constant dense<0.000000e+00> : vector<8x128xf32>
    %9 = tpu.matmul %7, %8, %cst_8 {dimension_numbers = #tpu.dot_dimension_numbers<[1], [0], [0], [1], [0, 0, 1, 1], [], []>} : vector<8x256xf32>, vector<256x128xf32>, vector<8x128xf32> -> vector<8x128xf32>
    %c0_9 = arith.constant 0 : index
    %c0_10 = arith.constant 0 : index
    %10 = vector.load %arg5[%c0_9, %c0_10] : memref<1x128xf32, #tpu.memory_space<vmem>>, vector<1x128xf32>
    %11 = vector.broadcast %10 : vector<1x128xf32> to vector<8x128xf32>
    %12 = arith.addf %9, %11 : vector<8x128xf32>
    %cst_11 = arith.constant 0.000000e+00 : f32
    %13 = vector.broadcast %cst_11 : f32 to vector<8x128xf32>
    %14 = arith.maximumf %12, %13 : vector<8x128xf32>
    %c0_12 = arith.constant 0 : index
    %c0_13 = arith.constant 0 : index
    %15 = vector.load %arg6[%c0_12, %c0_13] : memref<128x128xf32, #tpu.memory_space<vmem>>, vector<128x128xf32>
    %cst_14 = arith.constant dense<0.000000e+00> : vector<8x128xf32>
    %16 = tpu.matmul %14, %15, %cst_14 {dimension_numbers = #tpu.dot_dimension_numbers<[1], [0], [0], [1], [0, 0, 1, 1], [], []>} : vector<8x128xf32>, vector<128x128xf32>, vector<8x128xf32> -> vector<8x128xf32>
    %c0_15 = arith.constant 0 : index
    %c0_16 = arith.constant 0 : index
    %17 = vector.load %arg7[%c0_15, %c0_16] : memref<1x128xf32, #tpu.memory_space<vmem>>, vector<1x128xf32>
    %18 = vector.broadcast %17 : vector<1x128xf32> to vector<8x128xf32>
    %19 = arith.addf %16, %18 : vector<8x128xf32>
    %cst_17 = arith.constant 0.000000e+00 : f32
    %20 = vector.broadcast %cst_17 : f32 to vector<8x128xf32>
    %21 = arith.maximumf %19, %20 : vector<8x128xf32>
    %c0_18 = arith.constant 0 : index
    %c0_19 = arith.constant 0 : index
    %22 = vector.load %arg8[%c0_18, %c0_19] : memref<128x128xf32, #tpu.memory_space<vmem>>, vector<128x128xf32>
    %cst_20 = arith.constant dense<0.000000e+00> : vector<8x128xf32>
    %23 = tpu.matmul %21, %22, %cst_20 {dimension_numbers = #tpu.dot_dimension_numbers<[1], [0], [0], [1], [0, 0, 1, 1], [], []>} : vector<8x128xf32>, vector<128x128xf32>, vector<8x128xf32> -> vector<8x128xf32>
    %c0_21 = arith.constant 0 : index
    %c0_22 = arith.constant 0 : index
    %24 = vector.load %arg9[%c0_21, %c0_22] : memref<1x128xf32, #tpu.memory_space<vmem>>, vector<1x128xf32>
    %25 = vector.broadcast %24 : vector<1x128xf32> to vector<8x128xf32>
    %26 = arith.addf %23, %25 : vector<8x128xf32>
    %c0_23 = arith.constant 0 : index
    %c0_24 = arith.constant 0 : index
    %27 = vector.load %arg10[%c0_23, %c0_24] : memref<8x128xf32, #tpu.memory_space<vmem>>, vector<8x128xf32>
    tpu.vector_store %arg10[%c0_23, %c0_24], %26 {strides = array<i32>} : memref<8x128xf32, #tpu.memory_space<vmem>>, vector<8x128xf32>,
    return
  }
  func.func @transform_0(%arg0: i32) -> (i32, i32) {
    %c0_i32 = arith.constant 0 : i32
    %c0_i32_0 = arith.constant 0 : i32
    return %arg0, %c0_i32 : i32, i32
  }
  func.func @transform_1(%arg0: i32) -> (i32, i32) {
    %c0_i32 = arith.constant 0 : i32
    %c0_i32_0 = arith.constant 0 : i32
    %c0_i32_1 = arith.constant 0 : i32
    return %c0_i32, %c0_i32_0 : i32, i32
  }
  func.func @transform_2(%arg0: i32) -> (i32, i32) {
    %c0_i32 = arith.constant 0 : i32
    %c0_i32_0 = arith.constant 0 : i32
    %c0_i32_1 = arith.constant 0 : i32
    return %c0_i32, %c0_i32_0 : i32, i32
  }
  func.func @transform_3(%arg0: i32) -> (i32, i32) {
    %c0_i32 = arith.constant 0 : i32
    %c0_i32_0 = arith.constant 0 : i32
    %c0_i32_1 = arith.constant 0 : i32
    return %c0_i32, %c0_i32_0 : i32, i32
  }
  func.func @transform_4(%arg0: i32) -> (i32, i32) {
    %c0_i32 = arith.constant 0 : i32
    %c0_i32_0 = arith.constant 0 : i32
    %c0_i32_1 = arith.constant 0 : i32
    return %c0_i32, %c0_i32_0 : i32, i32
  }
  func.func @transform_5(%arg0: i32) -> (i32, i32) {
    %c0_i32 = arith.constant 0 : i32
    %c0_i32_0 = arith.constant 0 : i32
    %c0_i32_1 = arith.constant 0 : i32
    return %c0_i32, %c0_i32_0 : i32, i32
  }
  func.func @transform_6(%arg0: i32) -> (i32, i32) {
    %c0_i32 = arith.constant 0 : i32
    %c0_i32_0 = arith.constant 0 : i32
    %c0_i32_1 = arith.constant 0 : i32
    return %c0_i32, %c0_i32_0 : i32, i32
  }
  func.func @transform_7(%arg0: i32) -> (i32, i32) {
    %c0_i32 = arith.constant 0 : i32
    %c0_i32_0 = arith.constant 0 : i32
    %c0_i32_1 = arith.constant 0 : i32
    return %c0_i32, %c0_i32_0 : i32, i32
  }
  func.func @transform_8(%arg0: i32) -> (i32, i32) {
    %c0_i32 = arith.constant 0 : i32
    %c0_i32_0 = arith.constant 0 : i32
    %c0_i32_1 = arith.constant 0 : i32
    return %c0_i32, %c0_i32_0 : i32, i32
  }
  func.func @transform_9(%arg0: i32) -> (i32, i32) {
    %c0_i32 = arith.constant 0 : i32
    %c0_i32_0 = arith.constant 0 : i32
    return %arg0, %c0_i32 : i32, i32
  }
}

</mosaic_0001>

<bundles_post_ra>
// kernel: dqn_ram_forward.1
= control target key start
LH: loop header
LB: loop body
LE: loop exit
PB: predicated region body
PF: predicated region fallthrough
CT: control target
= control target key end

     0   :  { %14 = vsyncpa [#allocation3], 0  ;;  %s882_s0 = inlined_call_operand.vmem [shape: f32[8,128], index: 0, kind: input, shape index: {}]   ;;  %s883_s1 = inlined_call_operand.hbm [shape: f32[128,256], index: 1, kind: input, shape index: {}]   ;;  %s884_s2 = inlined_call_operand.vmem [shape: f32[1,256], index: 2, kind: input, shape index: {}]   ;;  %s885_s3 = inlined_call_operand.hbm [shape: f32[256,128], index: 3, kind: input, shape index: {}]   ;;  %s886_s4 = inlined_call_operand.vmem [shape: f32[1,128], index: 4, kind: input, shape index: {}]   ;;  %s887_s5 = inlined_call_operand.hbm [shape: f32[128,128], index: 5, kind: input, shape index: {}]   ;;  %s888_s6 = inlined_call_operand.vmem [shape: f32[1,128], index: 6, kind: input, shape index: {}]   ;;  %s889_s7 = inlined_call_operand.hbm [shape: f32[128,128], index: 7, kind: input, shape index: {}]   ;;  %s890_s8 = inlined_call_operand.vmem [shape: f32[1,128], index: 8, kind: input, shape index: {}]   ;;  %s891_s9 = inlined_call_operand.vmem [shape: f32[8,128], index: 9, kind: output, shape index: {}]  }
   0x1   :  { %15 = vsyncpa [#allocation5], 0 }
   0x2   :  { %16 = vsyncpa [#allocation8], 0  ;;  %s748_s30 = smov [#allocation4]  }
   0x3   :  { %s38_s10 = sshll.u32 %s748_s30, 4  ;;  %s39_s10 = int_to_ptr.vmem [resolvable:$true] %s38_s10 }
   0x4   :  { %s670_s11 = scalar_lea.vmem %s39_s10, 4096  ;;  %p675_p1 = scmp.lt.s32.totalorder %s39_s10, %s39_s10 }
   0x5   :  { %p671_p0 = scmp.ne.s32.totalorder %s39_s10, %s670_s11  ;;  %p676_p2 = scmp.lt.s32.totalorder %s670_s11, %s670_s11 }
   0x7   :  { %p677_p3 = por %p676_p2, %p675_p1 }
   0x9   :  { %p678_p4 = pnand %p677_p3, %p671_p0 }
   0xb   :  { %681 = shalt.err (!%p678_p4)
}
   0xc   :  { %s749_s12 = smov 128   ;;  %s750_s13 = smov 8  }
   0xd   :  { %44 = dma.hbm_to_vmem [thread:$0]  %s885_s3, 4096, %s39_s10, [#allocation5], %s749_s12, %s749_s12, %s750_s13  }
   0xe   :  { %s751_s16 = smov [#allocation2]  }
   0xf   :  { %s24_s17 = sshll.u32 %s751_s16, 4  ;;  %s25_s17 = int_to_ptr.vmem [resolvable:$true] %s24_s17 }
  0x10   :  { %s690_s18 = scalar_lea.vmem %s25_s17, 4096  ;;  %p695_p6 = scmp.lt.s32.totalorder %s25_s17, %s25_s17 }
  0x11   :  { %p691_p5 = scmp.ne.s32.totalorder %s25_s17, %s690_s18  ;;  %p696_p7 = scmp.lt.s32.totalorder %s690_s18, %s690_s18 }
  0x13   :  { %p697_p8 = por %p696_p7, %p695_p6 }
  0x15   :  { %p698_p9 = pnand %p697_p8, %p691_p5 }
  0x17   :  { %701 = shalt.err (!%p698_p9)
}
  0x18   :  { %s752_s19 = smov 256   ;;  %s753_s20 = smov 16  }
  0x19   :  { %30 = dma.hbm_to_vmem [thread:$0]  %s883_s1, 4096, %s25_s17, [#allocation3], %s752_s19, %s752_s19, %s753_s20  }
  0x1a   :  { %s754_s23 = smov [#allocation6]   ;;  %s755_s25 = smov [#allocation7]  }
  0x1b   :  { %s52_s24 = sshll.u32 %s754_s23, 4  ;;  %s66_s3 = sshll.u32 %s755_s25, 4  ;;  %s53_s24 = int_to_ptr.vmem [resolvable:$true] %s52_s24  ;;  %s67_s3 = int_to_ptr.vmem [resolvable:$true] %s66_s3 }
  0x1c   :  { %s710_s26 = scalar_lea.vmem %s53_s24, 2048  ;;  %p715_p11 = scmp.lt.s32.totalorder %s53_s24, %s53_s24 }
  0x1d   :  { %p711_p10 = scmp.ne.s32.totalorder %s53_s24, %s710_s26  ;;  %p716_p12 = scmp.lt.s32.totalorder %s710_s26, %s710_s26 }
  0x1f   :  { %p717_p13 = por %p716_p12, %p715_p11 }
  0x21   :  { %p718_p0 = pnand %p717_p13, %p711_p10 }
  0x23   :  { %721 = shalt.err (!%p718_p0)
}
  0x24   :  { %58 = dma.hbm_to_vmem [thread:$0]  %s887_s5, 2048, %s53_s24, [#allocation5], %s749_s12, %s749_s12, %s750_s13  }
  0x25   :  { %s730_s1 = scalar_lea.vmem %s67_s3, 2048  ;;  %p735_p2 = scmp.lt.s32.totalorder %s67_s3, %s67_s3 }
  0x26   :  { %p731_p1 = scmp.ne.s32.totalorder %s67_s3, %s730_s1  ;;  %p736_p3 = scmp.lt.s32.totalorder %s730_s1, %s730_s1 }
  0x28   :  { %p737_p4 = por %p736_p3, %p735_p2 }
  0x2a   :  { %p738_p5 = pnand %p737_p4, %p731_p1 }
  0x2c   :  { %741 = shalt.err (!%p738_p5)
}
  0x2d   :  { %72 = dma.hbm_to_vmem [thread:$0]  %s889_s7, 2048, %s67_s3, [#allocation8], %s749_s12, %s749_s12, %s750_s13  }
  0x2e   :  { %742 = dma.done.wait [#allocation3], 4096  }
  0x2f   :  { %743 = vsyncadd [#allocation3], 4294963200 }
  0x30   :  { %744 = dma.done.wait [#allocation5], 6144  }
  0x31   :  { %745 = vsyncadd [#allocation5], 4294961152 }
  0x32   :  { %746 = dma.done.wait [#allocation8], 2048  }
  0x33   :  { %747 = vsyncadd [#allocation8], 4294965248  ;;  %v756_v0 = vmov 0.0   ;;  %v119_v1 = vld [vmem:[#allocation2 + $0xf8] sm:$0xff]  ;;  %v118_v2 = vld [vmem:[#allocation2 + $0xf0] sm:$0xff]  ;;  %vm757_vm0 = vmmov 0  }
  0x34   :  { %196 = vmatprep.mubr.f32.mxu0 %v756_v0  ;;  %v117_v3 = vld [vmem:[#allocation2 + $0xe8] sm:$0xff]  ;;  %132 = vmatprep.subr.mxu0 %v119_v1  ;;  %v116_v4 = vld [vmem:[#allocation2 + $0xe0] sm:$0xff]  ;;  %v115_v5 = vld [vmem:[#allocation2 + $0xd8] sm:$0xff] }
  0x35   :  { %133 = vmatpush1.msra.mxu0 %v118_v2  ;;  %v114_v6 = vld [vmem:[#allocation2 + $0xd0] sm:$0xff]  ;;  %v113_v7 = vld [vmem:[#allocation2 + $0xc8] sm:$0xff]  ;;  %v112_v8 = vld [vmem:[#allocation2 + $0xc0] sm:$0xff] }
  0x36   :  { %134 = vmatprep.subr.mxu0 %v117_v3  ;;  %v111_v9 = vld [vmem:[#allocation2 + $0xb8] sm:$0xff]  ;;  %v110_v10 = vld [vmem:[#allocation2 + $0xb0] sm:$0xff]  ;;  %v109_v11 = vld [vmem:[#allocation2 + $0xa8] sm:$0xff] }
  0x37   :  { %135 = vmatpush1.msra.mxu0 %v116_v4  ;;  %v108_v12 = vld [vmem:[#allocation2 + $0xa0] sm:$0xff]  ;;  %v107_v13 = vld [vmem:[#allocation2 + $0x98] sm:$0xff]  ;;  %v106_v14 = vld [vmem:[#allocation2 + $0x90] sm:$0xff] }
  0x38   :  { %136 = vmatprep.subr.mxu0 %v115_v5  ;;  %v236_v15 = vld [vmem:[#allocation4 + $0xf8] sm:$0xff]  ;;  %v235_v17 = vld [vmem:[#allocation4 + $0xf0] sm:$0xff]  ;;  %v105_v18 = vld [vmem:[#allocation2 + $0x88] sm:$0xff] }
  0x39   :  { %137 = vmatpush1.msra.mxu0 %v114_v6  ;;  %v220_v16 = vld [vmem:[#allocation4 + $0x78] sm:$0xff]  ;;  %513 = vmatprep.subr.mxu1 %v236_v15  ;;  %v219_v19 = vld [vmem:[#allocation4 + $0x70] sm:$0xff]  ;;  %v104_v20 = vld [vmem:[#allocation2 + $0x80] sm:$0xff] }
  0x3a   :  { %138 = vmatprep.subr.mxu0 %v113_v7  ;;  %514 = vmatpush3.msra.mxu1 %v220_v16  ;;  %v234_v21 = vld [vmem:[#allocation4 + $0xe8] sm:$0xff]  ;;  %v103_v22 = vld [vmem:[#allocation2 + $0x78] sm:$0xff]  ;;  %v102_v24 = vld [vmem:[#allocation2 + $0x70] sm:$0xff] }
  0x3b   :  { %139 = vmatpush1.msra.mxu0 %v112_v8  ;;  %515 = vmatprep.subr.mxu1 %v235_v17  ;;  %v218_v23 = vld [vmem:[#allocation4 + $0x68] sm:$0xff]  ;;  %v233_v25 = vld [vmem:[#allocation4 + $0xe0] sm:$0xff]  ;;  %v232_v29 = vld [vmem:[#allocation4 + $0xd8] sm:$0xff] }
  0x3c   :  { %140 = vmatprep.subr.mxu0 %v111_v9  ;;  %516 = vmatpush3.msra.mxu1 %v219_v19  ;;  %v101_v26 = vld [vmem:[#allocation2 + $0x68] sm:$0xff]  ;;  %v217_v27 = vld [vmem:[#allocation4 + $0x60] sm:$0xff]  ;;  %v99_v30 = vld [vmem:[#allocation2 + $0x58] sm:$0xff] }
  0x3d   :  { %141 = vmatpush1.msra.mxu0 %v110_v10  ;;  %517 = vmatprep.subr.mxu1 %v234_v21  ;;  %v100_v28 = vld [vmem:[#allocation2 + $0x60] sm:$0xff]  ;;  %v216_v31 = vld [vmem:[#allocation4 + $0x58] sm:$0xff]  ;;  %v98_v32 = vld [vmem:[#allocation2 + $0x50] sm:$0xff] }
  0x3e   :  { %142 = vmatprep.subr.mxu0 %v109_v11  ;;  %518 = vmatpush3.msra.mxu1 %v218_v23  ;;  %v231_v33 = vld [vmem:[#allocation4 + $0xd0] sm:$0xff]  ;;  %v97_v34 = vld [vmem:[#allocation2 + $0x48] sm:$0xff]  ;;  %v96_v36 = vld [vmem:[#allocation2 + $0x40] sm:$0xff] }
  0x3f   :  { %143 = vmatpush1.msra.mxu0 %v108_v12  ;;  %519 = vmatprep.subr.mxu1 %v233_v25  ;;  %v215_v35 = vld [vmem:[#allocation4 + $0x50] sm:$0xff]  ;;  %v230_v37 = vld [vmem:[#allocation4 + $0xc8] sm:$0xff]  ;;  %v95_v38 = vld [vmem:[#allocation2 + $0x38] sm:$0xff] }
  0x40   :  { %144 = vmatprep.subr.mxu0 %v107_v13  ;;  %520 = vmatpush3.msra.mxu1 %v217_v27  ;;  %v214_v39 = vld [vmem:[#allocation4 + $0x48] sm:$0xff]  ;;  %v94_v40 = vld [vmem:[#allocation2 + $0x30] sm:$0xff]  ;;  %v229_v41 = vld [vmem:[#allocation4 + $0xc0] sm:$0xff] }
  0x41   :  { %145 = vmatpush1.msra.mxu0 %v106_v14  ;;  %521 = vmatprep.subr.mxu1 %v232_v29  ;;  %v93_v42 = vld [vmem:[#allocation2 + $0x28] sm:$0xff]  ;;  %v213_v43 = vld [vmem:[#allocation4 + $0x40] sm:$0xff]  ;;  %v228_v45 = vld [vmem:[#allocation4 + $0xb8] sm:$0xff]  ;;  %v122_v14 = vlaneseq }
  0x42   :  { %146 = vmatprep.subr.mxu0 %v105_v18  ;;  %522 = vmatpush3.msra.mxu1 %v216_v31  ;;  %v92_v44 = vld [vmem:[#allocation2 + $0x20] sm:$0xff]  ;;  %v91_v46 = vld [vmem:[#allocation2 + $0x18] sm:$0xff]  ;;  %v90_v48 = vld [vmem:[#allocation2 + $0x10] sm:$0xff] }
  0x43   :  { %147 = vmatpush1.msra.mxu0 %v104_v20  ;;  %523 = vmatprep.subr.mxu1 %v231_v33  ;;  %v212_v47 = vld [vmem:[#allocation4 + $0x38] sm:$0xff]  ;;  %v227_v49 = vld [vmem:[#allocation4 + $0xb0] sm:$0xff]  ;;  %v89_v50 = vld [vmem:[#allocation2 + $0x8] sm:$0xff]  ;;  %v123_v15 = vshrl.u32 %v122_v14, 7 }
  0x44   :  { %148 = vmatprep.subr.mxu0 %v103_v22  ;;  %524 = vmatpush3.msra.mxu1 %v215_v35  ;;  %v211_v51 = vld [vmem:[#allocation4 + $0x30] sm:$0xff]  ;;  %v88_v52 = vld [vmem:[#allocation2] sm:$0xff]  ;;  %v226_v53 = vld [vmem:[#allocation4 + $0xa8] sm:$0xff] }
  0x45   :  { %149 = vmatpush1.msra.mxu0 %v102_v24  ;;  %525 = vmatprep.subr.mxu1 %v230_v37  ;;  %v87_v54 = vld [vmem:[%s882_s0] sm:$0xff]  ;;  %v210_v55 = vld [vmem:[#allocation4 + $0x28] sm:$0xff]  ;;  %v224_v58 = vld [vmem:[#allocation4 + $0x98] sm:$0xff]  ;;  %v124_v16 = vsub.s32 0, %v123_v15  ;;  %v128_v18 = vsub.s32 1, %v123_v15 }
  0x46   :  { %150 = vmatprep.subr.mxu0 %v101_v26  ;;  %526 = vmatpush3.msra.mxu1 %v214_v39  ;;  %v225_v56 = vld [vmem:[#allocation4 + $0xa0] sm:$0xff]  ;;  %v208_v59 = vld [vmem:[#allocation4 + $0x18] sm:$0xff]  ;;  %v223_v60 = vld [vmem:[#allocation4 + $0x90] sm:$0xff] }
  0x47   :  { %151 = vmatpush1.msra.mxu0 %v100_v28  ;;  %527 = vmatprep.subr.mxu1 %v229_v41  ;;  %v209_v57 = vld [vmem:[#allocation4 + $0x20] sm:$0xff]  ;;  %v207_v61 = vld [vmem:[#allocation4 + $0x10] sm:$0xff]  ;;  %v222_v62 = vld [vmem:[#allocation4 + $0x88] sm:$0xff] }
  0x48   :  { %152 = vmatprep.subr.mxu0 %v99_v30  ;;  %528 = vmatpush3.msra.mxu1 %v213_v43  ;;  %v206_v63 = vld [vmem:[#allocation4 + $0x8] sm:$0xff]  ;;  %v221_v1 = vld [vmem:[#allocation4 + $0x80] sm:$0xff]  ;;  %v330_v3 = vld [vmem:[#allocation6 + $0x78] sm:$0xff] }
  0x49   :  { %153 = vmatpush1.msra.mxu0 %v98_v32  ;;  %529 = vmatprep.subr.mxu1 %v228_v45  ;;  %v205_v2 = vld [vmem:[#allocation4] sm:$0xff]  ;;  %v329_v4 = vld [vmem:[#allocation6 + $0x70] sm:$0xff]  ;;  %v328_v5 = vld [vmem:[#allocation6 + $0x68] sm:$0xff] }
  0x4a   :  { %154 = vmatprep.subr.mxu0 %v97_v34  ;;  %530 = vmatpush3.msra.mxu1 %v212_v47  ;;  %v327_v6 = vld [vmem:[#allocation6 + $0x60] sm:$0xff]  ;;  %v326_v7 = vld [vmem:[#allocation6 + $0x58] sm:$0xff]  ;;  %v325_v8 = vld [vmem:[#allocation6 + $0x50] sm:$0xff] }
  0x4b   :  { %155 = vmatpush1.msra.mxu0 %v96_v36  ;;  %531 = vmatprep.subr.mxu1 %v227_v49  ;;  %v324_v9 = vld [vmem:[#allocation6 + $0x48] sm:$0xff]  ;;  %v323_v10 = vld [vmem:[#allocation6 + $0x40] sm:$0xff]  ;;  %v322_v11 = vld [vmem:[#allocation6 + $0x38] sm:$0xff] }
  0x4c   :  { %156 = vmatprep.subr.mxu0 %v95_v38  ;;  %532 = vmatpush3.msra.mxu1 %v211_v51  ;;  %v321_v12 = vld [vmem:[#allocation6 + $0x30] sm:$0xff]  ;;  %v320_v13 = vld [vmem:[#allocation6 + $0x28] sm:$0xff]  ;;  %v120_v17 = vld [vmem:[%s884_s2] sm:$0x3] }
  0x4d   :  { %157 = vmatpush1.msra.mxu0 %v94_v40  ;;  %533 = vmatprep.subr.mxu1 %v226_v53  ;;  %v125_v19 = vrot.slane %v120_v17, %v124_v16  ;;  %v129_v20 = vrot.slane %v120_v17, %v128_v18  ;;  %v319_v27 = vld [vmem:[#allocation6 + $0x20] sm:$0xff]  ;;  %v318_v28 = vld [vmem:[#allocation6 + $0x18] sm:$0xff]  ;;  %v317_v29 = vld [vmem:[#allocation6 + $0x10] sm:$0xff] }
  0x4e   :  { %158 = vmatprep.subr.mxu0 %v93_v42  ;;  %534 = vmatpush3.msra.mxu1 %v210_v55  ;;  %v316_v30 = vld [vmem:[#allocation6 + $0x8] sm:$0xff]  ;;  %v315_v31 = vld [vmem:[#allocation6] sm:$0xff]  ;;  %v424_v32 = vld [vmem:[#allocation7 + $0x78] sm:$0xff] }
  0x4f   :  { %159 = vmatpush1.msra.mxu0 %v92_v44  ;;  %535 = vmatprep.subr.mxu1 %v225_v56  ;;  %v423_v33 = vld [vmem:[#allocation7 + $0x70] sm:$0xff]  ;;  %v422_v34 = vld [vmem:[#allocation7 + $0x68] sm:$0xff]  ;;  %v421_v35 = vld [vmem:[#allocation7 + $0x60] sm:$0xff] }
  0x50   :  { %160 = vmatprep.subr.mxu0 %v91_v46  ;;  %536 = vmatpush3.msra.mxu1 %v209_v57  ;;  %v420_v36 = vld [vmem:[#allocation7 + $0x58] sm:$0xff]  ;;  %v419_v37 = vld [vmem:[#allocation7 + $0x50] sm:$0xff]  ;;  %v418_v38 = vld [vmem:[#allocation7 + $0x48] sm:$0xff] }
  0x51   :  { %161 = vmatpush1.msra.mxu0 %v90_v48  ;;  %537 = vmatprep.subr.mxu1 %v224_v58  ;;  %v417_v39 = vld [vmem:[#allocation7 + $0x40] sm:$0xff]  ;;  %v416_v40 = vld [vmem:[#allocation7 + $0x38] sm:$0xff]  ;;  %v415_v41 = vld [vmem:[#allocation7 + $0x30] sm:$0xff] }
  0x52   :  { %162 = vmatprep.subr.mxu0 %v89_v50  ;;  %538 = vmatpush3.msra.mxu1 %v208_v59  ;;  %v414_v42 = vld [vmem:[#allocation7 + $0x28] sm:$0xff]  ;;  %v413_v43 = vld [vmem:[#allocation7 + $0x20] sm:$0xff]  ;;  %v412_v44 = vld [vmem:[#allocation7 + $0x18] sm:$0xff] }
  0x53   :  { %163 = vmatpush1.msra.mxu0 %v88_v52  ;;  %539 = vmatprep.subr.mxu1 %v223_v60  ;;  %v510_v46 = vld [vmem:[%s886_s4] ss:$0 sm:$0xff]  ;;  %v411_v51 = vld [vmem:[#allocation7 + $0x10] sm:$0xff]  ;;  %v410_v52 = vld [vmem:[#allocation7 + $0x8] sm:$0xff] }
  0x54   :  { %197 = vmatmul.mubr.f32.vlgmr.msra.gmra.mxu0 %v87_v54  ;;  %582 = vmatprep.subr.mxu0 %v756_v0  ;;  %v409_v53 = vld [vmem:[#allocation7] sm:$0xff] }
  0x55   :  { %540 = vmatpush3.msra.mxu1 %v207_v61  ;;  %583 = vmatpush3.msra.mxu0 %v330_v3  ;;  %v511_v54 = vld [vmem:[%s888_s6] ss:$0 sm:$0xff] }
  0x56   :  { %541 = vmatprep.subr.mxu1 %v222_v62  ;;  %584 = vmatprep.subr.mxu0 %v756_v0  ;;  %v512_v59 = vld [vmem:[%s890_s8] ss:$0 sm:$0xff] }
  0x57   :  { %542 = vmatpush3.msra.mxu1 %v206_v63  ;;  %585 = vmatpush3.msra.mxu0 %v329_v4 }
  0x58   :  { %543 = vmatprep.subr.mxu1 %v221_v1  ;;  %586 = vmatprep.subr.mxu0 %v756_v0 }
  0x59   :  { %544 = vmatpush3.msra.mxu1 %v205_v2  ;;  %587 = vmatpush3.msra.mxu0 %v328_v5 }
  0x5a   :  { %617 = vmatprep.subr.mxu1 %v756_v0  ;;  %588 = vmatprep.subr.mxu0 %v756_v0 }
  0x5b   :  { %589 = vmatpush3.msra.mxu0 %v327_v6  ;;  %614 = vmatprep.mubr.msk.f32.mxu0 %vm757_vm0, %v756_v0 }
  0x5c   :  { %590 = vmatprep.subr.mxu0 %v756_v0 }
  0x5d   :  { %591 = vmatpush3.msra.mxu0 %v326_v7 }
  0x5e   :  { %592 = vmatprep.subr.mxu0 %v756_v0 }
  0x5f   :  { %593 = vmatpush3.msra.mxu0 %v325_v8 }
  0x60   :  { %594 = vmatprep.subr.mxu0 %v756_v0 }
  0x61   :  { %595 = vmatpush3.msra.mxu0 %v324_v9 }
  0x62   :  { %596 = vmatprep.subr.mxu0 %v756_v0 }
  0x63   :  { %597 = vmatpush3.msra.mxu0 %v323_v10 }
  0x64   :  { %598 = vmatprep.subr.mxu0 %v756_v0 }
  0x65   :  { %599 = vmatpush3.msra.mxu0 %v322_v11 }
  0x66   :  { %600 = vmatprep.subr.mxu0 %v756_v0 }
  0x67   :  { %601 = vmatpush3.msra.mxu0 %v321_v12 }
  0x68   :  { %602 = vmatprep.subr.mxu0 %v756_v0 }
  0x69   :  { %603 = vmatpush3.msra.mxu0 %v320_v13 }
  0x6a   :  { %604 = vmatprep.subr.mxu0 %v756_v0 }
  0x6b   :  { %605 = vmatpush3.msra.mxu0 %v319_v27 }
  0x6c   :  { %606 = vmatprep.subr.mxu0 %v756_v0 }
  0x6d   :  { %607 = vmatpush3.msra.mxu0 %v318_v28 }
  0x6e   :  { %608 = vmatprep.subr.mxu0 %v756_v0 }
  0x6f   :  { %609 = vmatpush3.msra.mxu0 %v317_v29 }
  0x70   :  { %610 = vmatprep.subr.mxu0 %v756_v0 }
  0x71   :  { %611 = vmatpush3.msra.mxu0 %v316_v30 }
  0x72   :  { %612 = vmatprep.subr.mxu0 %v756_v0 }
  0x73   :  { %613 = vmatpush3.msra.mxu0 %v315_v31 }
 0x114   :  { %v198_v21 = vpop.f32.mrf.mxu0 }
 0x115   :  { %v199_v22 = vadd.f32 %v198_v21, %v125_v19 }
 0x116   :  { %v200_v23 = vpop.f32.mrf.mxu0 }
 0x117   :  { %v201_v24 = vadd.f32 %v200_v23, %v129_v20  ;;  %v203_v26 = vmax.f32 %v199_v22, 0.0 }
 0x119   :  { %v204_v25 = vmax.f32 %v201_v24, 0.0 }
 0x11b   :  { %308 = vmatprep.mubr.f32.mxu1 %v204_v25 }
 0x11c   :  { %309 = vmatmul.mubr.f32.vlgmr.msra.gmra.mxu1 %v203_v26 }
 0x11d   :  { %649 = vmatprep.mubr.msk.f32.mxu1 %vm757_vm0, %v756_v0  ;;  %618 = vmatpush3.msra.mxu1 %v424_v32 }
 0x11e   :  { %619 = vmatprep.subr.mxu1 %v756_v0 }
 0x11f   :  { %620 = vmatpush3.msra.mxu1 %v423_v33 }
 0x120   :  { %621 = vmatprep.subr.mxu1 %v756_v0 }
 0x121   :  { %622 = vmatpush3.msra.mxu1 %v422_v34 }
 0x122   :  { %623 = vmatprep.subr.mxu1 %v756_v0 }
 0x123   :  { %624 = vmatpush3.msra.mxu1 %v421_v35 }
 0x124   :  { %625 = vmatprep.subr.mxu1 %v756_v0 }
 0x125   :  { %626 = vmatpush3.msra.mxu1 %v420_v36 }
 0x126   :  { %627 = vmatprep.subr.mxu1 %v756_v0 }
 0x127   :  { %628 = vmatpush3.msra.mxu1 %v419_v37 }
 0x128   :  { %629 = vmatprep.subr.mxu1 %v756_v0 }
 0x129   :  { %630 = vmatpush3.msra.mxu1 %v418_v38 }
 0x12a   :  { %631 = vmatprep.subr.mxu1 %v756_v0 }
 0x12b   :  { %632 = vmatpush3.msra.mxu1 %v417_v39 }
 0x12c   :  { %633 = vmatprep.subr.mxu1 %v756_v0 }
 0x12d   :  { %634 = vmatpush3.msra.mxu1 %v416_v40 }
 0x12e   :  { %635 = vmatprep.subr.mxu1 %v756_v0 }
 0x12f   :  { %636 = vmatpush3.msra.mxu1 %v415_v41 }
 0x130   :  { %637 = vmatprep.subr.mxu1 %v756_v0 }
 0x131   :  { %638 = vmatpush3.msra.mxu1 %v414_v42 }
 0x132   :  { %639 = vmatprep.subr.mxu1 %v756_v0 }
 0x133   :  { %640 = vmatpush3.msra.mxu1 %v413_v43 }
 0x134   :  { %641 = vmatprep.subr.mxu1 %v756_v0 }
 0x135   :  { %642 = vmatpush3.msra.mxu1 %v412_v44 }
 0x136   :  { %643 = vmatprep.subr.mxu1 %v756_v0 }
 0x137   :  { %644 = vmatpush3.msra.mxu1 %v411_v51 }
 0x138   :  { %645 = vmatprep.subr.mxu1 %v756_v0 }
 0x139   :  { %646 = vmatpush3.msra.mxu1 %v410_v52 }
 0x13a   :  { %647 = vmatprep.subr.mxu1 %v756_v0 }
 0x13b   :  { %648 = vmatpush3.msra.mxu1 %v409_v53 }
 0x1dc   :  { %v545_v45 = vpop.f32.mrf.mxu1 }
 0x1de   :  { %v546_v47 = vpop.f32.mrf.mxu1 }
 0x1df   :  { %v547_v48 = vadd.f32 %v546_v47, %v545_v45 }
 0x1e1   :  { %v311_v49 = vadd.f32 %v547_v48, %v510_v46 }
 0x1e3   :  { %v314_v50 = vmax.f32 %v311_v49, 0.0 }
 0x1e5   :  { %615 = vmatmul.mubr.f32.vlgmr.msra.gmra.mxu0 %v314_v50 }
 0x2a5   :  { %v404_v55 = vpop.f32.mrf.mxu0 }
 0x2a6   :  { %v405_v56 = vadd.f32 %v511_v54, %v404_v55 }
 0x2a7   :  { %v616_v57 = vpop.f32.mrf.mxu0 }
 0x2a8   :  { %v408_v58 = vmax.f32 %v405_v56, 0.0 }
 0x2aa   :  { %650 = vmatmul.mubr.f32.vlgmr.msra.gmra.mxu1 %v408_v58 }
 0x36a   :  { %v498_v60 = vpop.f32.mrf.mxu1 }
 0x36b   :  { %v499_v61 = vadd.f32 %v512_v59, %v498_v60 }
 0x36c   :  { %v651_v62 = vpop.f32.mrf.mxu1 }
 0x36d   :  { %502 = vst [vmem:[%s891_s9] sm:$0xff] %v499_v61 }
 0x36e   :  { %507 = vsyncpa [#allocation3], 1 }
 0x36f   :  { %508 = vsyncpa [#allocation5], 1 }
 0x370   :  { %509 = vsyncpa [#allocation8], 1 }

</bundles_post_ra>
